<compile_context>
chip_gen: v7x
topology: tpu7x:2x2x1
jax: 0.10.0
libtpu: 0.0.40
codegen_flags: <defaults>
</compile_context>

<pallas_src>
import functools

import jax
import jax.numpy as jnp
from jax.experimental import pallas as pl
from jax.experimental.pallas import tpu as pltpu


def _alpha_loss_kernel(y_value_ref, value_ref, y_policy_ref, policy_ref,
                       out_ref, acc_ref, *, batch, tile_b):
    i = pl.program_id(0)

    # First grid step: seed the accumulator with the value-head error.
    @pl.when(i == 0)
    def _init():
        v = value_ref[...].astype(jnp.float32)      # (1, B), lane-dense
        yv = y_value_ref[...].astype(jnp.float32)   # (1, B)
        acc_ref[0] = jnp.sum((v - yv) ** 2)

    # Policy cross-entropy for this batch tile (f32 math, f32 accumulation).
    yp = y_policy_ref[...].astype(jnp.float32)      # (TB, A)
    p = policy_ref[...].astype(jnp.float32)         # (TB, A)
    row_err = jnp.sum(-p * jnp.log(1e-8 + yp), axis=1, keepdims=True)  # (TB, 1)

    # Mask rows of the padded last tile (static check: only emitted if needed).
    if batch % tile_b != 0:
        row_ids = i * tile_b + jax.lax.broadcasted_iota(jnp.int32, row_err.shape, 0)
        row_err = jnp.where(row_ids < batch, row_err, 0.0)

    acc_ref[0] += jnp.sum(row_err)

    # Last grid step: finalize the mean over the true batch size.
    @pl.when(i == pl.num_programs(0) - 1)
    def _finalize():
        out_ref[0, 0] = acc_ref[0] / jnp.float32(batch)


def _choose_tile_b(batch, actions, itemsize, target_bytes=2 << 20):
    """Batch tile such that each (TB, A) input block is ~target_bytes."""
    tb = max(1, target_bytes // max(1, actions * itemsize))
    if tb >= batch:
        return batch                # single tile covering the whole batch
    return max(8, (tb // 8) * 8)    # multiple of 8 sublanes


def alpha_loss(y_value, value, y_policy, policy, *, tile_b=None):
    """Pallas-TPU AlphaZero loss.

    y_value, value  : (B, 1) value-head target / prediction
    y_policy, policy: (B, A) policy target / prediction
    Returns a scalar f32 loss identical to PyTorch AlphaLoss.forward.
    """
    B, A = y_policy.shape
    assert policy.shape == (B, A)
    assert y_value.shape[0] == B and value.shape[0] == B

    if tile_b is None:
        tile_b = _choose_tile_b(B, A, jnp.dtype(y_policy.dtype).itemsize)
    num_tiles = pl.cdiv(B, tile_b)

    # Lane-dense (1, B) layout for the value head (avoids (B, 1) masked loads).
    y_value_l = y_value.reshape(1, B)
    value_l = value.reshape(1, B)

    kernel = functools.partial(_alpha_loss_kernel, batch=B, tile_b=tile_b)
    itemsize = int(jnp.dtype(y_policy.dtype).itemsize)

    out = pl.pallas_call(
        kernel,
        out_shape=jax.ShapeDtypeStruct((1, 1), jnp.float32),
        grid_spec=pltpu.PrefetchScalarGridSpec(
            num_scalar_prefetch=0,
            grid=(num_tiles,),
            in_specs=[
                pl.BlockSpec((1, B), lambda i: (0, 0)),       # y_value (1, B)
                pl.BlockSpec((1, B), lambda i: (0, 0)),       # value   (1, B)
                pl.BlockSpec((tile_b, A), lambda i: (i, 0)),  # y_policy
                pl.BlockSpec((tile_b, A), lambda i: (i, 0)),  # policy
            ],
            out_specs=pl.BlockSpec(memory_space=pltpu.SMEM),
            scratch_shapes=[pltpu.SMEM((1,), jnp.float32)],
        ),
        compiler_params=pltpu.CompilerParams(
            dimension_semantics=("arbitrary",),  # reduction axis carries the accumulator
        ),
        cost_estimate=pl.CostEstimate(
            flops=3 * B * A + 3 * B,
            transcendentals=B * A,
            bytes_accessed=(2 * B * A + 2 * B) * itemsize + 4,
        ),
    )(y_value_l, value_l, y_policy, policy)
    return out[0, 0]


def alpha_loss_ref(y_value, value, y_policy, policy):
    value_error = (value - y_value) ** 2
    policy_error = jnp.sum(-policy * jnp.log(1e-8 + y_policy.astype(jnp.float32)), axis=1)
    return jnp.mean(value_error.reshape(-1).astype(jnp.float32) + policy_error)


if __name__ == "__main__":
    key = jax.random.PRNGKey(0)
    k1, k2, k3, k4 = jax.random.split(key, 4)

    B, A = 20, 256  # small demo; B chosen so B % tile_b != 0 exercises masking

    value = jax.random.uniform(k1, (B, 1), jnp.float32, minval=-1.0, maxval=1.0)
    y_value = jax.random.uniform(k2, (B, 1), jnp.float32, minval=-1.0, maxval=1.0)
    y_policy = jax.nn.softmax(jax.random.normal(k3, (B, A), jnp.float32), axis=-1)
    policy = jax.nn.softmax(jax.random.normal(k4, (B, A), jnp.float32), axis=-1)

    ref = alpha_loss_ref(y_value, value, y_policy, policy)

    # Multi-tile path (grid=3, remainder tile masked in-kernel).
    loss_tiled = alpha_loss(y_value, value, y_policy, policy, tile_b=8)
    jax.block_until_ready(loss_tiled)
    assert jnp.allclose(loss_tiled, ref, rtol=1e-5, atol=1e-5), (loss_tiled, ref)

    # Auto tile-size path (single tile covers the whole small batch).
    loss_auto = alpha_loss(y_value, value, y_policy, policy)
    jax.block_until_ready(loss_auto)
    assert jnp.allclose(loss_auto, ref, rtol=1e-5, atol=1e-5), (loss_auto, ref)

    print("KERNEL_OK")
</pallas_src>

<mosaic_0001>
module attributes {stable_mosaic.version = 11 : i64} {
  func.func @_alpha_loss_kernel(%arg0: i32, %arg1: memref<1x20xf32, #tpu.memory_space<vmem>>, %arg2: memref<1x20xf32, #tpu.memory_space<vmem>>, %arg3: memref<8x256xf32, #tpu.memory_space<vmem>>, %arg4: memref<8x256xf32, #tpu.memory_space<vmem>>, %arg5: memref<1x1xf32, #tpu.memory_space<smem>>, %arg6: memref<1xf32, #tpu.memory_space<smem>>) attributes {dimension_semantics = [#tpu.dimension_semantics<arbitrary>], iteration_bounds = array<i64: 3>, scalar_prefetch = 0 : i64, scratch_operands = 1 : i64, tpu.core_type = #tpu.core_type<tc>, window_params = [{pipeline_mode = #tpu.pipeline_mode<synchronous>, transform_indices = @transform_0, window_bounds = array<i64: 1, 20>}, {pipeline_mode = #tpu.pipeline_mode<synchronous>, transform_indices = @transform_1, window_bounds = array<i64: 1, 20>}, {transform_indices = @transform_2, window_bounds = array<i64: 8, 256>}, {transform_indices = @transform_3, window_bounds = array<i64: 8, 256>}, {transform_indices = @transform_4, window_bounds = array<i64: 1, 1>}]} {
    %c0_i32 = arith.constant 0 : i32
    %0 = arith.cmpi eq, %arg0, %c0_i32 : i32
    %1 = arith.extui %0 : i1 to i32
    %c0_i32_0 = arith.constant 0 : i32
    %2 = arith.cmpi ne, %1, %c0_i32_0 : i32
    scf.if %2 {
      %c0_11 = arith.constant 0 : index
      %c0_12 = arith.constant 0 : index
      %31 = vector.load %arg2[%c0_11, %c0_12] : memref<1x20xf32, #tpu.memory_space<vmem>>, vector<1x20xf32>
      %c0_13 = arith.constant 0 : index
      %c0_14 = arith.constant 0 : index
      %32 = vector.load %arg1[%c0_13, %c0_14] : memref<1x20xf32, #tpu.memory_space<vmem>>, vector<1x20xf32>
      %33 = arith.subf %31, %32 : vector<1x20xf32>
      %34 = arith.mulf %33, %33 : vector<1x20xf32>
      %35 = vector.shape_cast %34 : vector<1x20xf32> to vector<1x1x20xf32>
      %cst_15 = arith.constant dense<0.000000e+00> : vector<1xf32>
      %36 = vector.multi_reduction <add>, %35, %cst_15 [1, 2] : vector<1x1x20xf32> to vector<1xf32>
      %37 = vector.shape_cast %36 : vector<1xf32> to vector<1x1x1xf32>
      %38 = vector.extract %37[0, 0, 0] : f32 from vector<1x1x1xf32>
      %c0_16 = arith.constant 0 : index
      %39 = memref.load %arg6[%c0_16] : memref<1xf32, #tpu.memory_space<smem>>
      memref.store %38, %arg6[%c0_16] : memref<1xf32, #tpu.memory_space<smem>>
    } else {
    }
    %c0 = arith.constant 0 : index
    %c0_1 = arith.constant 0 : index
    %3 = vector.load %arg3[%c0, %c0_1] : memref<8x256xf32, #tpu.memory_space<vmem>>, vector<8x256xf32>
    %c0_2 = arith.constant 0 : index
    %c0_3 = arith.constant 0 : index
    %4 = vector.load %arg4[%c0_2, %c0_3] : memref<8x256xf32, #tpu.memory_space<vmem>>, vector<8x256xf32>
    %cst = arith.constant 0.000000e+00 : f32
    %5 = vector.broadcast %cst : f32 to vector<8x256xf32>
    %6 = arith.subf %5, %4 : vector<8x256xf32>
    %cst_4 = arith.constant 9.99999993E-9 : f32
    %7 = vector.broadcast %cst_4 : f32 to vector<8x256xf32>
    %8 = arith.addf %7, %3 : vector<8x256xf32>
    %9 = math.log %8 : vector<8x256xf32>
    %10 = arith.mulf %6, %9 : vector<8x256xf32>
    %cst_5 = arith.constant dense<0.000000e+00> : vector<8xf32>
    %11 = vector.multi_reduction <add>, %10, %cst_5 [1] : vector<8x256xf32> to vector<8xf32>
    %12 = vector.shape_cast %11 : vector<8xf32> to vector<8x1xf32>
    %c8_i32 = arith.constant 8 : i32
    %13 = arith.muli %arg0, %c8_i32 : i32
    %14 = tpu.iota {dimensions = array<i32: 0>} : vector<8x1xi32>
    %15 = vector.broadcast %13 : i32 to vector<8x1xi32>
    %16 = arith.addi %15, %14 : vector<8x1xi32>
    %c20_i32 = arith.constant 20 : i32
    %17 = vector.broadcast %c20_i32 : i32 to vector<8x1xi32>
    %18 = arith.cmpi slt, %16, %17 : vector<8x1xi32>
    %cst_6 = arith.constant 0.000000e+00 : f32
    %19 = vector.broadcast %cst_6 : f32 to vector<8x1xf32>
    %20 = arith.select %18, %12, %19 : vector<8x1xi1>, vector<8x1xf32>
    %c0_7 = arith.constant 0 : index
    %21 = memref.load %arg6[%c0_7] : memref<1xf32, #tpu.memory_space<smem>>
    %22 = vector.shape_cast %20 : vector<8x1xf32> to vector<1x8x1xf32>
    %cst_8 = arith.constant dense<0.000000e+00> : vector<1xf32>
    %23 = vector.multi_reduction <add>, %22, %cst_8 [1, 2] : vector<1x8x1xf32> to vector<1xf32>
    %24 = vector.shape_cast %23 : vector<1xf32> to vector<1x1x1xf32>
    %25 = vector.extract %24[0, 0, 0] : f32 from vector<1x1x1xf32>
    %26 = arith.addf %21, %25 : f32
    %c0_9 = arith.constant 0 : index
    %27 = memref.load %arg6[%c0_9] : memref<1xf32, #tpu.memory_space<smem>>
    memref.store %26, %arg6[%c0_9] : memref<1xf32, #tpu.memory_space<smem>>
    %c2_i32 = arith.constant 2 : i32
    %28 = arith.cmpi eq, %arg0, %c2_i32 : i32
    %29 = arith.extui %28 : i1 to i32
    %c0_i32_10 = arith.constant 0 : i32
    %30 = arith.cmpi ne, %29, %c0_i32_10 : i32
    scf.if %30 {
      %c0_11 = arith.constant 0 : index
      %31 = memref.load %arg6[%c0_11] : memref<1xf32, #tpu.memory_space<smem>>
      %cst_12 = arith.constant 2.000000e+01 : f32
      %32 = arith.divf %31, %cst_12 : f32
      %c0_13 = arith.constant 0 : index
      %c0_14 = arith.constant 0 : index
      %33 = memref.load %arg5[%c0_13, %c0_14] : memref<1x1xf32, #tpu.memory_space<smem>>
      memref.store %32, %arg5[%c0_13, %c0_14] : memref<1x1xf32, #tpu.memory_space<smem>>
    } else {
    }
    return
  }
  func.func @transform_0(%arg0: i32) -> (i32, i32) {
    %c0_i32 = arith.constant 0 : i32
    %c0_i32_0 = arith.constant 0 : i32
    %c0_i32_1 = arith.constant 0 : i32
    return %c0_i32, %c0_i32_0 : i32, i32
  }
  func.func @transform_1(%arg0: i32) -> (i32, i32) {
    %c0_i32 = arith.constant 0 : i32
    %c0_i32_0 = arith.constant 0 : i32
    %c0_i32_1 = arith.constant 0 : i32
    return %c0_i32, %c0_i32_0 : i32, i32
  }
  func.func @transform_2(%arg0: i32) -> (i32, i32) {
    %c0_i32 = arith.constant 0 : i32
    %c0_i32_0 = arith.constant 0 : i32
    return %arg0, %c0_i32 : i32, i32
  }
  func.func @transform_3(%arg0: i32) -> (i32, i32) {
    %c0_i32 = arith.constant 0 : i32
    %c0_i32_0 = arith.constant 0 : i32
    return %arg0, %c0_i32 : i32, i32
  }
  func.func @transform_4(%arg0: i32) -> (i32, i32) {
    %c0_i32 = arith.constant 0 : i32
    %c0_i32_0 = arith.constant 0 : i32
    %c0_i32_1 = arith.constant 0 : i32
    return %c0_i32, %c0_i32_0 : i32, i32
  }
}

</mosaic_0001>

<bundles_post_ra>
// kernel: tpu_custom_call.1
= control target key start
LH: loop header
LB: loop body
LE: loop exit
PB: predicated region body
PF: predicated region fallthrough
CT: control target
= control target key end

     0   :  { %9 = vsyncpa [#allocation4], 0  ;;  %s892_s0 = inlined_call_operand.hbm [shape: f32[1,20], index: 0, kind: input, shape index: {}]   ;;  %s893_s1 = inlined_call_operand.vmem [shape: f32[1,20], index: 1, kind: input, shape index: {}]   ;;  %s894_s2 = inlined_call_operand.hbm [shape: f32[20,256], index: 2, kind: input, shape index: {}]   ;;  %s895_s3 = inlined_call_operand.hbm [shape: f32[20,256], index: 3, kind: input, shape index: {}]   ;;  %s896_s4 = inlined_call_operand.hbm [shape: f32[1,1], index: 4, kind: output, shape index: {}]  }
   0x1   :  { %10 = vsyncpa [#allocation7], 0 }
   0x2   :  { %12 = vsyncpa [#allocation7 + $0x1], 0 }
   0x3   :  { %13 = vsyncpa [#allocation5], 0  ;;  %s677_s15 = smov 0   ;;  %s679_s16 = smov 0  }
   0x4   :  { %s681_s17 = smov 0   ;;  %s683_s18 = smov 0  }
   0x5 LB: > { %s698_s19 = sadd.s32 1, %s646_s18   ;;  %s68_s20 = sadd.s32 1, %s642_s17  ;;  %s646_s18 = sphi %s683_s18, %s916_s18   ;;  %s642_s17 = sphi %s681_s17, %s915_s17   ;;  %s638_s16 = sphi %s679_s16, %s914_s16   ;;  %s634_s15 = sphi %s677_s15, %s913_s15  }
   0x6   : > { %s65_s21 = ssub.s32 %s646_s18, %s698_s19  ;;  %p75_p0 = scmp.ne.s32.totalorder %s642_s17, %s638_s16 }
   0x7   : > { %p66_p1 = scmp.eq.s32.totalorder %s65_s21, 0  ;;  %p76_p2 = scmp.eq.s32.totalorder %s646_s18, 0 }
   0x8   : > { %p461_p3 = scmp.lt.s32.totalorder %s646_s18, 3  ;;  %s166_s23 = sand.u32 1, %s646_s18  }
   0x9   : > { %s708_s22 = scalar_select %p66_p1, %s642_s17, %s68_s20  }
   0xa   : > { %p77_p4 = por %p76_p2, %p75_p0  ;;  %s168_s24 = sand.u32 1, %s642_s17  }
   0xb   : > { %s712_s25 = sshll.u32 %s168_s24, 4  ;;  %s429_s26 = sshll.u32 %s646_s18, 8 }
   0xc   : > { %s720_s29 = scalar_lea.hbm %s894_s2, %s429_s26  ;;  %s170_s30 = scalar_lea.vmem [#allocation6], %s712_s25 }
   0xd   : > { %s178_s5 = sshll.u32 %s170_s30, 4  ;;  %p723_p5 = pnand %p461_p3, %p77_p4  ;;  %s727_s5 = int_to_ptr.vmem [resolvable:$true] %s178_s5 }
   0xe   : > { %s729_s7 = scalar_lea.sflag [#allocation7], %s166_s23  ;;  %s504_s8 = scalar_lea.hbm %s720_s29, 256 }
   0xf   : > { %p505_p6 = scmp.ne.s32.totalorder %s720_s29, %s504_s8  ;;  %p506_p7 = pneg %p723_p5 }
  0x10   : > { %s509_s11 = scalar_lea.hbm %s894_s2, 768  ;;  %p510_p10 = scmp.lt.u32.totalorder %s720_s29, %s894_s2 }
  0x11   : > { %p507_p8 = pnand %p506_p7, %p505_p6  ;;  %p511_p11 = scmp.lt.u32.totalorder %s509_s11, %s504_s8 }
  0x12   : > { %p513_p13 = scmp.lt.u32.totalorder %s504_s8, %s720_s29 }
  0x13   : > { %p508_p9 = pneg %p507_p8  ;;  %p512_p12 = por %p511_p11, %p510_p10 }
  0x15   : > { %p514_p0 = por %p513_p13, %p512_p12 }
  0x17   : > { %p515_p1 = pnand %p514_p0, %p508_p9 }
  0x19   : > { %518 = shalt.err (!%p515_p1)
}
  0x1a   : > { %s519_s14 = scalar_lea.vmem %s727_s5, 256  ;;  %s648_s20 = smov [#allocation6]  }
  0x1b   : > { %p520_p2 = scmp.ne.s32.totalorder %s727_s5, %s519_s14  ;;  %s524_s21 = sshll.u32 %s648_s20, 4  ;;  %s525_s21 = int_to_ptr.vmem [resolvable:$false] %s524_s21 }
  0x1c   : > { %s526_s23 = scalar_lea.vmem %s525_s21, 512  ;;  %p527_p6 = scmp.lt.s32.totalorder %s727_s5, %s525_s21 }
  0x1d   : > { %p522_p3 = pnand %p520_p2, %p506_p7  ;;  %p528_p8 = scmp.lt.s32.totalorder %s526_s23, %s519_s14 }
  0x1f   : > { %p523_p4 = pneg %p522_p3  ;;  %p529_p10 = por %p528_p8, %p527_p6 }
  0x21   : > { %p530_p11 = pnand %p529_p10, %p523_p4 }
  0x23   : > { %533 = shalt.err (!%p530_p11)
}
  0x24   : > { %456 = dma.hbm_to_vmem [thread:$0]  (!%p723_p5), %s720_s29, 256, %s727_s5, %s729_s7  }
  0x25   : > { %s758_s24 = sadd.s32 4294967295, %s646_s18   ;;  %p81_p12 = scmp.ne.s32.totalorder %s638_s16, %s634_s15 }
  0x26   : > { %p897_p9 = scmp.eq.s32.totalorder %s758_s24, 0  ;;  %p409_p13 = scmp.ge.s32.totalorder %s646_s18, 1 }
  0x27   : > { %p139_p0 = scmp.lt.s32.totalorder %s646_s18, 4  ;;  %s777_s29 = scalar_lea.hbm %s895_s3, %s429_s26 }
  0x28   : > { %p768_p2 = por %p897_p9, %p81_p12  ;;  %s649_s5 = smov [#allocation3]  }
  0x29   : > { %p779_p3 = pnand %p409_p13, %p139_p0  ;;  %s783_s8 = sshll.u32 %s649_s5, 4  ;;  %s153_s8 = int_to_ptr.vmem [resolvable:$true] %s783_s8 }
  0x2a   : > { %s902_s27 = scalar_select %p768_p2, 1, 0 }
  0x2b   : > { %s903_s15 = scalar_select %p779_p3, 1, 0 }
  0x2c   : > { %s189_s9 = scalar_lea.vmem [#allocation8], %s712_s25  ;;  %s534_s18 = scalar_lea.hbm %s777_s29, 256 }
  0x2d   : > { %s197_s10 = sshll.u32 %s189_s9, 4  ;;  %p535_p6 = scmp.ne.s32.totalorder %s777_s29, %s534_s18  ;;  %s198_s10 = int_to_ptr.vmem [resolvable:$true] %s197_s10 }
  0x2e   : > { %s539_s12 = scalar_lea.hbm %s895_s3, 768  ;;  %p540_p11 = scmp.lt.u32.totalorder %s777_s29, %s895_s3 }
  0x2f   : > { %p537_p8 = pnand %p535_p6, %p506_p7  ;;  %p541_p12 = scmp.lt.u32.totalorder %s539_s12, %s534_s18 }
  0x30   : > { %p543_p0 = scmp.lt.u32.totalorder %s534_s18, %s777_s29 }
  0x31   : > { %p538_p10 = pneg %p537_p8  ;;  %p542_p13 = por %p541_p12, %p540_p11 }
  0x33   : > { %p544_p1 = por %p543_p0, %p542_p13 }
  0x35   : > { %p545_p4 = pnand %p544_p1, %p538_p10 }
  0x37   : > { %548 = shalt.err (!%p545_p4)
}
  0x38   : > { %s549_s25 = scalar_lea.vmem %s198_s10, 256  ;;  %s650_s20 = smov [#allocation8]  }
  0x39   : > { %p550_p9 = scmp.ne.s32.totalorder %s198_s10, %s549_s25  ;;  %s554_s21 = sshll.u32 %s650_s20, 4  ;;  %s555_s21 = int_to_ptr.vmem [resolvable:$false] %s554_s21 }
  0x3a   : > { %s556_s23 = scalar_lea.vmem %s555_s21, 512  ;;  %p557_p2 = scmp.lt.s32.totalorder %s198_s10, %s555_s21 }
  0x3b   : > { %p552_p6 = pnand %p550_p9, %p506_p7  ;;  %p558_p3 = scmp.lt.s32.totalorder %s556_s23, %s549_s25 }
  0x3d   : > { %p553_p8 = pneg %p552_p6  ;;  %p559_p11 = por %p558_p3, %p557_p2 }
  0x3f   : > { %p560_p12 = pnand %p559_p11, %p553_p8 }
  0x41   : > { %563 = shalt.err (!%p560_p12)
}
  0x42   : > { %459 = dma.hbm_to_vmem [thread:$0]  (!%p723_p5), %s777_s29, 256, %s198_s10, %s729_s7  }
  0x43   : > { %p904_p7 = scmp.eq.s32.totalorder %s758_s24, 0  ;;  %p905_p9 = scmp.ne.s32.totalorder %s903_s15, 0 }
  0x44   : > { %s564_s9 = scalar_lea.hbm %s892_s0, 16 }
  0x45   : > { %p906_p1 = pneg %p905_p9  ;;  %p565_p2 = scmp.ne.s32.totalorder %s892_s0, %s564_s9 }
  0x46   : > { %p571_p13 = scmp.lt.u32.totalorder %s564_s9, %s892_s0 }
  0x47   : > { %p814_p4 = pnand %p906_p1, %p904_p7 }
  0x49   : > { %p566_p3 = pneg %p814_p4 }
  0x4b   : > { %p567_p5 = pnand %p566_p3, %p565_p2 }
  0x4d   : > { %p568_p10 = pneg %p567_p5 }
  0x4f   : > { %p573_p0 = pnand %p571_p13, %p568_p10 }
  0x51   : > { %576 = shalt.err (!%p573_p0)
}
  0x52   : > { %s577_s10 = scalar_lea.vmem %s153_s8, 16  ;;  %s584_s26 = scalar_lea.vmem %s153_s8, 32 }
  0x53   : > { %p578_p6 = scmp.ne.s32.totalorder %s153_s8, %s577_s10  ;;  %p585_p12 = scmp.lt.s32.totalorder %s153_s8, %s153_s8 }
  0x54   : > { %p586_p7 = scmp.lt.s32.totalorder %s584_s26, %s577_s10 }
  0x55   : > { %p580_p8 = pnand %p578_p6, %p566_p3 }
  0x56   : > { %p587_p1 = por %p586_p7, %p585_p12 }
  0x57   : > { %p581_p11 = pneg %p580_p8 }
  0x59   : > { %p588_p9 = pnand %p587_p1, %p581_p11 }
  0x5b   : > { %591 = shalt.err (!%p588_p9)
}
  0x5c   : > { %452 = dma.hbm_to_vmem [thread:$0]  (!%p814_p4), %s892_s0, 16, %s153_s8, [#allocation4]  }
  0x5d   : > { %p908_p2 = scmp.ne.s32.totalorder %s903_s15, 0 }
  0x5e   : > { %p909_p5 = scmp.eq.s32.totalorder (!%p908_p2), %s758_s24, 0 }
  0x5f   : > { %206 = sbr.rel (%p908_p2) target bundleno = 701 (0x2bd), region = 36 }
  0x66   : > { %621 = dma.done.wait (%p909_p5), [#allocation4], 16   ;;  %p910_p3 = pmov %p909_p5 }
  0x67   : > { %s212_s13 = sand.u32 1, %s758_s24   ;;  %s214_s14 = sand.u32 1, %s638_s16  }
  0x68   : > { %623 = vsyncadd (%p910_p3), [#allocation4], 4294967280  ;;  %s842_s25 = sshll.u32 %s214_s14, 4  ;;  %s213_s20 = scalar_lea.sflag [#allocation7], %s212_s13 }
  0x69   : > { %s216_s21 = scalar_lea.vmem [#allocation6], %s842_s25  ;;  %p911_p9 = scmp.ne.s32.totalorder %s902_s27, 0 }
  0x6b   : > { %625 = dma.done.wait (%p911_p9), %s213_s20, 512  }
  0x6c   : > { %627 = vsyncadd (%p911_p9), %s213_s20, 4294966784  ;;  %s225_s15 = scalar_lea.vmem [#allocation8], %s842_s25  ;;  %p912_p4 = scmp.ne.s32.totalorder %s758_s24, 0 }
  0x6d   : > { %v254_v0 = vld [vmem:[%s893_s1] sm:$0x1] (!%p912_p4)  ;;  %vm258_vm0 = vcmask (!%p912_p4), 155648  }
  0x6e   : > { %253 = sbr.rel (%p912_p4) target bundleno = 321 (0x141), region = 52  ;;  %v255_v1 = vld [vmem:[#allocation3] sm:$0x1] (!%p912_p4) }
  0x6f   : > { %v256_v2 = vsub.f32 (!%p912_p4), %v254_v0, %v255_v1 }
  0x71   : > { %v257_v3 = vmul.f32 (!%p912_p4), %v256_v2, %v256_v2 }
  0x73   : > { %v259_v4 = vsel (!%p912_p4), %vm258_vm0, %v257_v3, 0.0 }
  0x74   : > { %260 = vadd.xlane.f32.xlu0 (!%p912_p4), %v259_v4 }
 0x101   : > { %v261_v5 = vpop.xlane.xlu0 %260 }
 0x102   : > { %v262_v6 = vrot.slane %v261_v5, 4 }
 0x104   : > { %v263_v7 = vadd.f32 %v262_v6, %v261_v5 }
 0x106   : > { %v264_v8 = vrot.slane %v263_v7, 2 }
 0x108   : > { %v265_v9 = vadd.f32 %v264_v8, %v263_v7 }
 0x10a   : > { %v266_v10 = vrot.slane %v265_v9, 1 }
 0x10c   : > { %v267_v11 = vadd.f32 %v266_v10, %v265_v9 }
 0x10e   : > { %431 = vpush %v267_v11 }
 0x13f   : > { %s432_s27 = spop %431 }
 0x140   : > { %270 = sst [smem:[#allocation2]] %s432_s27 }
 0x141 PF: > { %v271_v12 = vld [vmem:[%s216_s21] sm:$0xff]  ;;  %v272_v13 = vld [vmem:[%s216_s21 + $0x8] sm:$0xff]  ;;  %v289_v27 = vlaneseq  ;;  %s423_s28 = sshll.u32 %s758_s24, 3  ;;  %vm296_vm2 = vcmask 7168   ;;  %s295_s30 = sld [smem:[#allocation2]] }
 0x142   : > { %v277_v14 = vadd.f32 1e-08, %v271_v12  ;;  %v278_v15 = vadd.f32 1e-08, %v272_v13  ;;  %v273_v16 = vld [vmem:[%s225_s15] sm:$0xff]  ;;  %v274_v17 = vld [vmem:[%s225_s15 + $0x8] sm:$0xff]  ;;  %v291_v29 = vstv %s423_s28 }
 0x143   : > { %v275_v18 = vsub.f32 0.0, %v273_v16  ;;  %v276_v20 = vsub.f32 0.0, %v274_v17  ;;  %v290_v28 = vshrl.u32 %v289_v27, 7  ;;  %p463_p10 = scmp.eq.s32.totalorder %s758_s24, 2  ;;  %s592_s29 = scalar_lea.hbm %s896_s4, 16 }
 0x144   : > { %500 = vlog2.f32 %v277_v14  ;;  %p593_p13 = scmp.ne.s32.totalorder %s896_s4, %s592_s29  ;;  %p598_p8 = scmp.lt.u32.totalorder %s592_s29, %s896_s4 }
 0x145   : > { %502 = vlog2.f32 %v278_v15  ;;  %v292_v30 = vadd.s32 %v291_v29, %v290_v28 }
 0x146   : > { %p594_p0 = pnand %p593_p13, %p463_p10 }
 0x147   : > { %vm293_vm1 = vcmp.lt.s32.totalorder %v292_v30, 20 }
 0x148   : > { %p595_p6 = pneg %p594_p0 }
 0x14a   : > { %p600_p11 = pnand %p598_p8, %p595_p6 }
 0x14e   : > { %v501_v19 = vpop.eup %500 }
 0x14f   : > { %v503_v21 = vpop.eup %502  ;;  %v280_v22 = vmul.f32 0.6931472, %v501_v19 }
 0x150   : > { %v282_v23 = vmul.f32 0.6931472, %v503_v21 }
 0x151   : > { %v283_v24 = vmul.f32 %v280_v22, %v275_v18 }
 0x152   : > { %v284_v25 = vmul.f32 %v282_v23, %v276_v20 }
 0x154   : > { %v285_v26 = vadd.f32 %v284_v25, %v283_v24 }
 0x156   : > { %286 = vadd.xlane.f32.xlu0 %v285_v26 }
 0x1e3   : > { %v287_v31 = vpop.xlane.xlu0 %286 }
 0x1e4   : > { %v294_v32 = vsel %vm293_vm1, %v287_v31, 0.0 }
 0x1e5   : > { %v297_v33 = vsel %vm296_vm2, %v294_v32, 0.0 }
 0x1e6   : > { %298 = vadd.xlane.f32.xlu0 %v297_v33 }
 0x273   : > { %v299_v34 = vpop.xlane.xlu0 %298 }
 0x274   : > { %v300_v35 = vrot.slane %v299_v34, 4 }
 0x276   : > { %v301_v36 = vadd.f32 %v300_v35, %v299_v34 }
 0x278   : > { %v302_v37 = vrot.slane %v301_v36, 2 }
 0x27a   : > { %v303_v38 = vadd.f32 %v302_v37, %v301_v36 }
 0x27c   : > { %v304_v39 = vrot.slane %v303_v38, 1 }
 0x27e   : > { %v305_v40 = vadd.f32 %v304_v39, %v303_v38 }
 0x280   : > { %433 = vpush %v305_v40 }
 0x2b1   : > { %s434_s5 = spop %433 }
 0x2b2   : > { %s307_s9 = sadd.f32 %s434_s5, %s295_s30 }
 0x2b4   : > { %309 = sst [smem:[#allocation2]] %s307_s9  ;;  %s317_s6 = smul.f32 0.05, %s307_s9 }
 0x2b6   : > { %444 = sst [smem:[#allocation9]] (%p463_p10), %s317_s6 }
 0x2b7   : > { %603 = shalt.err (!%p600_p11)
}
 0x2b8   : > { %s651_s13 = smov [#allocation9]  }
 0x2b9   : > { %446 = dma.smem_to_hbm (%p463_p10), %s651_s13, 16, %s896_s4, [#allocation5]  }
 0x2ba   : > { %629 = dma.done.wait (%p463_p10), [#allocation5], 16  }
 0x2bb   : > { %631 = vsyncadd (%p463_p10), [#allocation5], 4294967280 }
 0x2bc   : > { %333 = sfence }
 0x2bd PF: > { %p16_p12 = scmp.ge.s32.totalorder %s698_s19, 5   ;;  %s913_s15 = smov %s638_s16 }
 0x2be   : > { %s914_s16 = smov %s642_s17  ;;  %s915_s17 = smov %s708_s22 }
 0x2bf   : > { %s916_s18 = smov %s698_s19  ;;  %18 = sbr.rel (!%p16_p12) target bundleno = 5 (0x5), region = 100 }
 0x2c6   :  { %339 = vsyncpa [#allocation4], 1 }
 0x2c7   :  { %341 = vsyncpa [#allocation4 + $0x1], 1 }
 0x2c8   :  { %342 = vsyncpa [#allocation7], 1 }
 0x2c9   :  { %344 = vsyncpa [#allocation7 + $0x1], 1 }
 0x2ca   :  { %345 = vsyncpa [#allocation5], 1 }
 0x2cb   :  { %347 = vsyncpa [#allocation5 + $0x1], 1 }

</bundles_post_ra>
